<compile_context>
chip_gen: v6e
topology: v6e:2x2x1
jax: 0.10.0
libtpu: 0.0.40
codegen_flags: <defaults>
</compile_context>

<pallas_src>
import functools

import jax
import jax.numpy as jnp
from jax.experimental import pallas as pl
from jax.experimental.pallas import tpu as pltpu


def _round_up(x, m):
    return (x + m - 1) // m * m


def _cdiv(x, m):
    return (x + m - 1) // m


# ----------------------------------------------------------------------------
# Pallas kernel (one batch tile per grid step)
# ----------------------------------------------------------------------------
def _decnfm_rate_kernel(rescale_rate, b_true, tile_b, dim,
                        packed_ref, rate_ref, s_ref, q_ref,
                        w1_ref, b1_ref, w2_ref, b2_ref, w3r_ref, b3_ref,
                        pred_ref, part_ref):
    D = dim
    # Split the lane-packed [user | item | cate] stream; upcast to f32 so all
    # arithmetic/accumulation stays f32 even when streaming bf16.
    u = packed_ref[:, 0:D].astype(jnp.float32)          # (tile_b, D)
    it = packed_ref[:, D:2 * D].astype(jnp.float32)     # (tile_b, D)
    c = packed_ref[:, 2 * D:3 * D].astype(jnp.float32)  # (tile_b, D)
    s = s_ref[...]                                      # (1, D) = sum_c weighted_cate
    q = q_ref[...]                                      # (1, D) = sum_c weighted_cate^2

    uu = u * u
    ii = it * it
    cc = c * c

    # ---- user-confounder mediator (concat([user, weighted_cate_table]) FM) ----
    us = u + s
    med = 0.5 * (us * us - (uu + q))                    # (tile_b, D)

    # ---- FM over the 4 fields [user, item, cate, mediator] --------------------
    tot = u + it + c + med
    sq = uu + ii + cc + med * med
    fm_out = 0.5 * (tot * tot - sq)                     # (tile_b, D)

    # ---- MLP head: Linear->ReLU->Linear->ReLU->Linear(1), dropout = identity --
    mm_dt = w1_ref.dtype                                # MXU operand dtype
    h1 = jnp.maximum(
        jnp.dot(fm_out.astype(mm_dt), w1_ref[...],
                preferred_element_type=jnp.float32) + b1_ref[...], 0.0)
    h2 = jnp.maximum(
        jnp.dot(h1.astype(mm_dt), w2_ref[...],
                preferred_element_type=jnp.float32) + b2_ref[...], 0.0)
    # Final Linear(D,1): contract D against the (1,D) weight row so the result
    # is already lane-dense (1, tile_b) — no (tile_b,1) relayout, no masked
    # partial stores on the output.
    logits = jax.lax.dot_general(
        w3r_ref[...], h2, (((1,), (1,)), ((), ())),
        preferred_element_type=jnp.float32) + b3_ref[...]          # (1, tile_b)

    pred = logits
    if rescale_rate:
        pred = 1.0 + 4.0 * jax.nn.sigmoid(pred)
    pred_ref[...] = pred[None]                          # (1, 1, tile_b)

    # ---- per-tile partial loss sums (MSE *and* reg masked vs batch padding) ---
    base = pl.program_id(0) * tile_b
    row = base + jax.lax.broadcasted_iota(jnp.int32, (tile_b, 1), 0)
    col = base + jax.lax.broadcasted_iota(jnp.int32, (1, tile_b), 1)

    reg = jnp.sum(jnp.where(row < b_true, uu + ii + cc, 0.0))
    diff = jnp.where(col < b_true,
                     pred - rate_ref[...].reshape(1, tile_b), 0.0)
    sq_err = jnp.sum(diff * diff)

    lane = jax.lax.broadcasted_iota(jnp.int32, (1, 1, 128), 2)
    part_ref[...] = jnp.where(lane == 0, sq_err,
                              jnp.where(lane == 1, reg, 0.0))


# ----------------------------------------------------------------------------
# Wrapper
# ----------------------------------------------------------------------------
def decnfm_rate_forward(user, item, cate, rate, params, *,
                        l2rg=1e-4, rescale_rate=True, tile_b=None,
                        stream_dtype=jnp.bfloat16):
    """Returns (loss scalar, pred_rate (B,)) — matches DecNFM_rate.forward semantics."""
    D = params["user_embs"].shape[1]
    B = int(user.shape[0])

    # Tile sizing: sublane-aligned for the stream dtype; default 1024 is
    # v7x-safe (64 MiB VMEM, keeps >=2 tiles for both TCs at realistic batch).
    # On v5e/v6e (128 MiB VMEM, lower HBM BW) 4096 amortizes per-step overhead.
    sub_mult = max(8, 32 // jnp.dtype(stream_dtype).itemsize)   # f32:8 bf16:16
    if tile_b is None:
        tile_b = 1024 if B > 1024 else B
    tile_b = max(sub_mult, min(_round_up(int(tile_b), sub_mult),
                               _round_up(B, sub_mult)))
    num_tiles = _cdiv(B, tile_b)
    Bp = num_tiles * tile_b
    pad = Bp - B

    # Pad only the cheap (B,)-sized inputs; the (Bp, 3D) packed embedding
    # stream comes out of the gather already at padded size (no extra HBM pass
    # over the big streams).  Padded rows gather row 0 and are masked in-kernel.
    rate_f = rate.astype(jnp.float32)
    if pad:
        user = jnp.pad(user, (0, pad))
        item = jnp.pad(item, (0, pad))
        cate = jnp.pad(cate, (0, pad))
        rate_f = jnp.pad(rate_f, (0, pad))

    # TODO(synk): fuse this gather into the kernel (PrefetchScalarGridSpec +
    # per-row DMA) to drop the remaining packed-stream write+read.
    ue = jnp.take(params["user_embs"], user, axis=0).astype(stream_dtype)
    ie = jnp.take(params["item_embs"], item, axis=0).astype(stream_dtype)
    ce = jnp.take(params["cate_embs"], cate, axis=0).astype(stream_dtype)
    packed = jnp.concatenate([ue, ie, ce], axis=-1)     # (Bp, 3D) lane-dense
    rate3 = rate_f.reshape(num_tiles, 1, tile_b)        # lane-dense targets

    # Batch-invariant category reductions hoisted out of the kernel (f32).
    wc = params["cate_embs"].astype(jnp.float32) * params["cate_prior"][:, None]
    s = jnp.sum(wc, axis=0, keepdims=True)              # (1, D)
    q = jnp.sum(wc * wc, axis=0, keepdims=True)         # (1, D)

    # MXU operands follow the stream dtype (accumulation stays f32 in-kernel).
    w1 = params["w1"].astype(stream_dtype)
    w2 = params["w2"].astype(stream_dtype)
    b1 = params["b1"].astype(jnp.float32)
    b2 = params["b2"].astype(jnp.float32)
    w3r = params["w3"].astype(jnp.float32).reshape(1, D)
    b3 = params["b3"].astype(jnp.float32)

    # ---- VMEM budget with 128-lane / 8-sublane padding + intermediate scratch --
    _lanes = lambda n: _round_up(max(int(n), 1), 128)
    _subl = lambda n: _round_up(max(int(n), 1), 8)
    sbytes = jnp.dtype(stream_dtype).itemsize
    W = 3 * D
    stream_blk = _subl(tile_b) * _lanes(W) * sbytes          # packed embeddings
    vec_blk = _subl(1) * _lanes(tile_b) * 4                  # rate / pred blocks
    part_blk = _subl(1) * _lanes(128) * 4
    wgt_bytes = (2 * _subl(D) * _lanes(D) + 5 * _subl(1) * _lanes(D)
                 + _subl(1) * _lanes(1)) * 4
    scratch = 14 * _subl(tile_b) * _lanes(D) * 4             # spilled f32 temps
    vmem_bytes = (2 * (stream_blk + 2 * vec_blk + part_blk)
                  + 2 * wgt_bytes + scratch)
    # Cap well under v7x's 64 MiB physical VMEM; raise toward 64-96 MiB on
    # v5e/v6e (128 MiB) if using larger tiles there.
    vmem_limit = int(min(max(vmem_bytes + (8 << 20), 16 << 20), 48 << 20))

    flops = Bp * (4 * D * D + 2 * D + 24 * D)
    bytes_accessed = (Bp * _lanes(W) * sbytes + Bp * 4       # packed + rate in
                      + wgt_bytes                            # resident weights
                      + Bp * 4 + num_tiles * 128 * 4)        # pred + partials out
    cost = pl.CostEstimate(flops=int(flops),
                           transcendentals=int(Bp if rescale_rate else 0),
                           bytes_accessed=int(bytes_accessed))

    kernel = functools.partial(_decnfm_rate_kernel,
                               bool(rescale_rate), B, tile_b, D)

    row2 = lambda i: (i, 0)
    row3 = lambda i: (i, 0, 0)
    const2 = lambda i: (0, 0)

    pred_tiles, parts = pl.pallas_call(
        kernel,
        out_shape=(jax.ShapeDtypeStruct((num_tiles, 1, tile_b), jnp.float32),
                   jax.ShapeDtypeStruct((num_tiles, 1, 128), jnp.float32)),
        grid=(num_tiles,),
        in_specs=[
            pl.BlockSpec((tile_b, 3 * D), row2),   # packed [user|item|cate]
            pl.BlockSpec((1, 1, tile_b), row3),    # rate (lane-dense)
            pl.BlockSpec((1, D), const2),          # s
            pl.BlockSpec((1, D), const2),          # q
            pl.BlockSpec((D, D), const2),          # w1
            pl.BlockSpec((1, D), const2),          # b1
            pl.BlockSpec((D, D), const2),          # w2
            pl.BlockSpec((1, D), const2),          # b2
            pl.BlockSpec((1, D), const2),          # w3 (row)
            pl.BlockSpec((1, 1), const2),          # b3
        ],
        out_specs=(
            pl.BlockSpec((1, 1, tile_b), row3),    # pred (lane-dense)
            pl.BlockSpec((1, 1, 128), row3),       # per-tile partial sums
        ),
        compiler_params=pltpu.CompilerParams(
            dimension_semantics=("parallel",),
            vmem_limit_bytes=vmem_limit),
        cost_estimate=cost,
    )(packed, rate3, s, q, w1, b1, w2, b2, w3r, b3)

    pred = pred_tiles.reshape(Bp)[:B]
    sq_sum = jnp.sum(parts[:, 0, 0])
    reg_sum = jnp.sum(parts[:, 0, 1])
    loss = sq_sum / B + l2rg * 0.5 * reg_sum / B
    return loss, pred


# ----------------------------------------------------------------------------
# Pure-JAX reference (mirrors the PyTorch code, eval-mode dropout)
# ----------------------------------------------------------------------------
def _reference(user, item, cate, rate, params, *, l2rg, rescale_rate):
    ue = jnp.take(params["user_embs"], user, axis=0)[:, None, :]   # (B,1,D)
    ie = jnp.take(params["item_embs"], item, axis=0)[:, None, :]
    ce = jnp.take(params["cate_embs"], cate, axis=0)[:, None, :]
    B = user.shape[0]
    wc = params["cate_embs"] * params["cate_prior"][:, None]
    wc = jnp.broadcast_to(wc[None], (B,) + wc.shape)
    ucf = jnp.concatenate([ue, wc], axis=1)
    med = 0.5 * (ucf.sum(1) ** 2 - (ucf ** 2).sum(1))
    fm_emb = jnp.concatenate([ue, ie, ce, med[:, None, :]], axis=1)
    fm_out = 0.5 * (fm_emb.sum(1) ** 2 - (fm_emb ** 2).sum(1))
    h1 = jax.nn.relu(fm_out @ params["w1"] + params["b1"])
    h2 = jax.nn.relu(h1 @ params["w2"] + params["b2"])
    logits = (h2 @ params["w3"] + params["b3"])[:, 0]
    pred = 1.0 + 4.0 * jax.nn.sigmoid(logits) if rescale_rate else logits
    rate_loss = jnp.mean((pred - rate.astype(jnp.float32)) ** 2)
    reg = 0.5 * (jnp.sum(ue ** 2) + jnp.sum(ie ** 2) + jnp.sum(ce ** 2))
    return rate_loss + l2rg * reg / B, pred


# ----------------------------------------------------------------------------
if __name__ == "__main__":
    key = jax.random.PRNGKey(0)
    ks = jax.random.split(key, 12)

    user_num, item_num, cate_num = 50, 60, 16
    D = 32          # args.edim
    B = 13          # deliberately NOT a multiple of the tile -> exercises masking
    l2rg = 1e-4
    rescale_rate = True

    def normal(k, shape, std):
        return std * jax.random.normal(k, shape, dtype=jnp.float32)

    params = {
        # nn.Embedding weights, std=0.01
        "user_embs": normal(ks[0], (user_num, D), 0.01),
        "item_embs": normal(ks[1], (item_num, D), 0.01),
        "cate_embs": normal(ks[2], (cate_num, D), 0.01),
        # cate_prior: probability vector over categories
        "cate_prior": jax.nn.softmax(
            jax.random.normal(ks[3], (cate_num,), dtype=jnp.float32)),
        # DNN: Linear(D,D) -> ReLU -> Linear(D,D) -> ReLU -> Linear(D,1)
        "w1": normal(ks[4], (D, D), 0.05), "b1": normal(ks[5], (1, D), 0.05),
        "w2": normal(ks[6], (D, D), 0.05), "b2": normal(ks[7], (1, D), 0.05),
        "w3": normal(ks[8], (D, 1), 0.05), "b3": normal(ks[9], (1, 1), 0.05),
    }

    user = jax.random.randint(ks[10], (B,), 0, user_num)
    item = jax.random.randint(ks[11], (B,), 0, item_num)
    cate = jax.random.randint(jax.random.fold_in(key, 99), (B,), 0, cate_num)
    rate = jax.random.uniform(jax.random.fold_in(key, 7), (B,), jnp.float32, 1.0, 5.0)

    ref_loss, ref_pred = _reference(user, item, cate, rate, params,
                                    l2rg=l2rg, rescale_rate=rescale_rate)

    # f32 streaming path, small forced tile -> multi-tile grid + padding mask.
    loss32, pred32 = decnfm_rate_forward(user, item, cate, rate, params,
                                         l2rg=l2rg, rescale_rate=rescale_rate,
                                         tile_b=8, stream_dtype=jnp.float32)
    jax.block_until_ready((loss32, pred32))
    assert jnp.allclose(loss32, ref_loss, rtol=1e-3, atol=1e-4), (loss32, ref_loss)
    assert jnp.allclose(pred32, ref_pred, rtol=1e-3, atol=1e-4)

    # Default bf16 streaming fast path (looser tolerance: bf16-rounded streams).
    loss16, pred16 = decnfm_rate_forward(user, item, cate, rate, params,
                                         l2rg=l2rg, rescale_rate=rescale_rate)
    jax.block_until_ready((loss16, pred16))
    assert jnp.allclose(loss16, ref_loss, rtol=3e-2, atol=3e-2), (loss16, ref_loss)
    assert jnp.allclose(pred16, ref_pred, rtol=3e-2, atol=3e-2)

    print("KERNEL_OK")
</pallas_src>

<mosaic_0001>
module attributes {stable_mosaic.version = 11 : i64} {
  func.func @_decnfm_rate_kernel(%arg0: i32, %arg1: memref<8x96xf32, #tpu.memory_space<vmem>>, %arg2: memref<1x1x8xf32, #tpu.memory_space<vmem>>, %arg3: memref<1x32xf32, #tpu.memory_space<vmem>>, %arg4: memref<1x32xf32, #tpu.memory_space<vmem>>, %arg5: memref<32x32xf32, #tpu.memory_space<vmem>>, %arg6: memref<1x32xf32, #tpu.memory_space<vmem>>, %arg7: memref<32x32xf32, #tpu.memory_space<vmem>>, %arg8: memref<1x32xf32, #tpu.memory_space<vmem>>, %arg9: memref<1x32xf32, #tpu.memory_space<vmem>>, %arg10: memref<1x1xf32, #tpu.memory_space<vmem>>, %arg11: memref<1x1x8xf32, #tpu.memory_space<vmem>>, %arg12: memref<1x1x128xf32, #tpu.memory_space<vmem>>) attributes {dimension_semantics = [#tpu.dimension_semantics<parallel>], iteration_bounds = array<i64: 2>, scalar_prefetch = 0 : i64, scratch_operands = 0 : i64, tpu.core_type = #tpu.core_type<tc>, window_params = [{transform_indices = @transform_0, window_bounds = array<i64: 8, 96>}, {transform_indices = @transform_1, window_bounds = array<i64: 1, 1, 8>}, {pipeline_mode = #tpu.pipeline_mode<synchronous>, transform_indices = @transform_2, window_bounds = array<i64: 1, 32>}, {pipeline_mode = #tpu.pipeline_mode<synchronous>, transform_indices = @transform_3, window_bounds = array<i64: 1, 32>}, {pipeline_mode = #tpu.pipeline_mode<synchronous>, transform_indices = @transform_4, window_bounds = array<i64: 32, 32>}, {pipeline_mode = #tpu.pipeline_mode<synchronous>, transform_indices = @transform_5, window_bounds = array<i64: 1, 32>}, {pipeline_mode = #tpu.pipeline_mode<synchronous>, transform_indices = @transform_6, window_bounds = array<i64: 32, 32>}, {pipeline_mode = #tpu.pipeline_mode<synchronous>, transform_indices = @transform_7, window_bounds = array<i64: 1, 32>}, {pipeline_mode = #tpu.pipeline_mode<synchronous>, transform_indices = @transform_8, window_bounds = array<i64: 1, 32>}, {pipeline_mode = #tpu.pipeline_mode<synchronous>, transform_indices = @transform_9, window_bounds = array<i64: 1, 1>}, {transform_indices = @transform_10, window_bounds = array<i64: 1, 1, 8>}, {transform_indices = @transform_11, window_bounds = array<i64: 1, 1, 128>}]} {
    %c0 = arith.constant 0 : index
    %c0_0 = arith.constant 0 : index
    %0 = vector.load %arg1[%c0, %c0_0] : memref<8x96xf32, #tpu.memory_space<vmem>>, vector<8x32xf32>
    %c0_1 = arith.constant 0 : index
    %c32 = arith.constant 32 : index
    %1 = vector.load %arg1[%c0_1, %c32] : memref<8x96xf32, #tpu.memory_space<vmem>>, vector<8x32xf32>
    %c0_2 = arith.constant 0 : index
    %c64 = arith.constant 64 : index
    %2 = vector.load %arg1[%c0_2, %c64] : memref<8x96xf32, #tpu.memory_space<vmem>>, vector<8x32xf32>
    %c0_3 = arith.constant 0 : index
    %c0_4 = arith.constant 0 : index
    %3 = vector.load %arg3[%c0_3, %c0_4] : memref<1x32xf32, #tpu.memory_space<vmem>>, vector<1x32xf32>
    %c0_5 = arith.constant 0 : index
    %c0_6 = arith.constant 0 : index
    %4 = vector.load %arg4[%c0_5, %c0_6] : memref<1x32xf32, #tpu.memory_space<vmem>>, vector<1x32xf32>
    %5 = arith.mulf %0, %0 : vector<8x32xf32>
    %6 = arith.mulf %1, %1 : vector<8x32xf32>
    %7 = arith.mulf %2, %2 : vector<8x32xf32>
    %8 = vector.broadcast %3 : vector<1x32xf32> to vector<8x32xf32>
    %9 = arith.addf %0, %8 : vector<8x32xf32>
    %10 = arith.mulf %9, %9 : vector<8x32xf32>
    %11 = vector.broadcast %4 : vector<1x32xf32> to vector<8x32xf32>
    %12 = arith.addf %5, %11 : vector<8x32xf32>
    %13 = arith.subf %10, %12 : vector<8x32xf32>
    %cst = arith.constant 5.000000e-01 : f32
    %14 = vector.broadcast %cst : f32 to vector<8x32xf32>
    %15 = arith.mulf %14, %13 : vector<8x32xf32>
    %16 = arith.addf %0, %1 : vector<8x32xf32>
    %17 = arith.addf %16, %2 : vector<8x32xf32>
    %18 = arith.addf %17, %15 : vector<8x32xf32>
    %19 = arith.addf %5, %6 : vector<8x32xf32>
    %20 = arith.addf %19, %7 : vector<8x32xf32>
    %21 = arith.mulf %15, %15 : vector<8x32xf32>
    %22 = arith.addf %20, %21 : vector<8x32xf32>
    %23 = arith.mulf %18, %18 : vector<8x32xf32>
    %24 = arith.subf %23, %22 : vector<8x32xf32>
    %cst_7 = arith.constant 5.000000e-01 : f32
    %25 = vector.broadcast %cst_7 : f32 to vector<8x32xf32>
    %26 = arith.mulf %25, %24 : vector<8x32xf32>
    %c0_8 = arith.constant 0 : index
    %c0_9 = arith.constant 0 : index
    %27 = vector.load %arg5[%c0_8, %c0_9] : memref<32x32xf32, #tpu.memory_space<vmem>>, vector<32x32xf32>
    %cst_10 = arith.constant dense<0.000000e+00> : vector<8x32xf32>
    %28 = tpu.matmul %26, %27, %cst_10 {dimension_numbers = #tpu.dot_dimension_numbers<[1], [0], [0], [1], [0, 0, 1, 1], [], []>} : vector<8x32xf32>, vector<32x32xf32>, vector<8x32xf32> -> vector<8x32xf32>
    %c0_11 = arith.constant 0 : index
    %c0_12 = arith.constant 0 : index
    %29 = vector.load %arg6[%c0_11, %c0_12] : memref<1x32xf32, #tpu.memory_space<vmem>>, vector<1x32xf32>
    %30 = vector.broadcast %29 : vector<1x32xf32> to vector<8x32xf32>
    %31 = arith.addf %28, %30 : vector<8x32xf32>
    %cst_13 = arith.constant 0.000000e+00 : f32
    %32 = vector.broadcast %cst_13 : f32 to vector<8x32xf32>
    %33 = arith.maximumf %31, %32 : vector<8x32xf32>
    %c0_14 = arith.constant 0 : index
    %c0_15 = arith.constant 0 : index
    %34 = vector.load %arg7[%c0_14, %c0_15] : memref<32x32xf32, #tpu.memory_space<vmem>>, vector<32x32xf32>
    %cst_16 = arith.constant dense<0.000000e+00> : vector<8x32xf32>
    %35 = tpu.matmul %33, %34, %cst_16 {dimension_numbers = #tpu.dot_dimension_numbers<[1], [0], [0], [1], [0, 0, 1, 1], [], []>} : vector<8x32xf32>, vector<32x32xf32>, vector<8x32xf32> -> vector<8x32xf32>
    %c0_17 = arith.constant 0 : index
    %c0_18 = arith.constant 0 : index
    %36 = vector.load %arg8[%c0_17, %c0_18] : memref<1x32xf32, #tpu.memory_space<vmem>>, vector<1x32xf32>
    %37 = vector.broadcast %36 : vector<1x32xf32> to vector<8x32xf32>
    %38 = arith.addf %35, %37 : vector<8x32xf32>
    %cst_19 = arith.constant 0.000000e+00 : f32
    %39 = vector.broadcast %cst_19 : f32 to vector<8x32xf32>
    %40 = arith.maximumf %38, %39 : vector<8x32xf32>
    %c0_20 = arith.constant 0 : index
    %c0_21 = arith.constant 0 : index
    %41 = vector.load %arg9[%c0_20, %c0_21] : memref<1x32xf32, #tpu.memory_space<vmem>>, vector<1x32xf32>
    %cst_22 = arith.constant dense<0.000000e+00> : vector<1x8xf32>
    %42 = tpu.matmul %41, %40, %cst_22 {dimension_numbers = #tpu.dot_dimension_numbers<[1], [1], [0], [0], [0, 0, 1, 0], [], []>} : vector<1x32xf32>, vector<8x32xf32>, vector<1x8xf32> -> vector<1x8xf32>
    %c0_23 = arith.constant 0 : index
    %c0_24 = arith.constant 0 : index
    %43 = vector.load %arg10[%c0_23, %c0_24] : memref<1x1xf32, #tpu.memory_space<vmem>>, vector<1x1xf32>
    %44 = vector.broadcast %43 : vector<1x1xf32> to vector<1x8xf32>
    %45 = arith.addf %42, %44 : vector<1x8xf32>
    %46 = arith.negf %45 : vector<1x8xf32>
    %47 = math.exp %46 : vector<1x8xf32>
    %cst_25 = arith.constant 1.000000e+00 : f32
    %48 = vector.broadcast %cst_25 : f32 to vector<1x8xf32>
    %49 = arith.addf %48, %47 : vector<1x8xf32>
    %50 = arith.divf %48, %49 : vector<1x8xf32>
    %cst_26 = arith.constant 4.000000e+00 : f32
    %51 = vector.broadcast %cst_26 : f32 to vector<1x8xf32>
    %52 = arith.mulf %51, %50 : vector<1x8xf32>
    %cst_27 = arith.constant 1.000000e+00 : f32
    %53 = vector.broadcast %cst_27 : f32 to vector<1x8xf32>
    %54 = arith.addf %53, %52 : vector<1x8xf32>
    %55 = vector.shape_cast %54 : vector<1x8xf32> to vector<1x1x8xf32>
    %c0_28 = arith.constant 0 : index
    %c0_29 = arith.constant 0 : index
    %c0_30 = arith.constant 0 : index
    %56 = vector.load %arg11[%c0_28, %c0_29, %c0_30] : memref<1x1x8xf32, #tpu.memory_space<vmem>>, vector<1x1x8xf32>
    tpu.vector_store %arg11[%c0_28, %c0_29, %c0_30], %55 {strides = array<i32>} : memref<1x1x8xf32, #tpu.memory_space<vmem>>, vector<1x1x8xf32>,
    %c8_i32 = arith.constant 8 : i32
    %57 = arith.muli %arg0, %c8_i32 : i32
    %58 = tpu.iota {dimensions = array<i32: 0>} : vector<8x1xi32>
    %59 = vector.broadcast %57 : i32 to vector<8x1xi32>
    %60 = arith.addi %59, %58 : vector<8x1xi32>
    %61 = tpu.iota {dimensions = array<i32: 1>} : vector<1x8xi32>
    %62 = vector.broadcast %57 : i32 to vector<1x8xi32>
    %63 = arith.addi %62, %61 : vector<1x8xi32>
    %c13_i32 = arith.constant 13 : i32
    %64 = vector.broadcast %c13_i32 : i32 to vector<8x1xi32>
    %65 = arith.cmpi slt, %60, %64 : vector<8x1xi32>
    %66 = arith.addf %5, %6 : vector<8x32xf32>
    %67 = arith.addf %66, %7 : vector<8x32xf32>
    %cst_31 = arith.constant 0.000000e+00 : f32
    %68 = vector.shape_cast %65 : vector<8x1xi1> to vector<8x1xi1>
    %69 = vector.broadcast %68 : vector<8x1xi1> to vector<8x32xi1>
    %70 = vector.broadcast %cst_31 : f32 to vector<8x32xf32>
    %71 = arith.select %69, %67, %70 : vector<8x32xi1>, vector<8x32xf32>
    %72 = vector.shape_cast %71 : vector<8x32xf32> to vector<1x8x32xf32>
    %cst_32 = arith.constant dense<0.000000e+00> : vector<1xf32>
    %73 = vector.multi_reduction <add>, %72, %cst_32 [1, 2] : vector<1x8x32xf32> to vector<1xf32>
    %74 = vector.shape_cast %73 : vector<1xf32> to vector<1x1x1xf32>
    %75 = vector.extract %74[0, 0, 0] : f32 from vector<1x1x1xf32>
    %c13_i32_33 = arith.constant 13 : i32
    %76 = vector.broadcast %c13_i32_33 : i32 to vector<1x8xi32>
    %77 = arith.cmpi slt, %63, %76 : vector<1x8xi32>
    %c0_34 = arith.constant 0 : index
    %c0_35 = arith.constant 0 : index
    %c0_36 = arith.constant 0 : index
    %78 = vector.load %arg2[%c0_34, %c0_35, %c0_36] : memref<1x1x8xf32, #tpu.memory_space<vmem>>, vector<1x1x8xf32>
    %79 = vector.shape_cast %78 : vector<1x1x8xf32> to vector<1x8xf32>
    %80 = arith.subf %54, %79 : vector<1x8xf32>
    %cst_37 = arith.constant 0.000000e+00 : f32
    %81 = vector.broadcast %cst_37 : f32 to vector<1x8xf32>
    %82 = arith.select %77, %80, %81 : vector<1x8xi1>, vector<1x8xf32>
    %83 = arith.mulf %82, %82 : vector<1x8xf32>
    %84 = vector.shape_cast %83 : vector<1x8xf32> to vector<1x1x8xf32>
    %cst_38 = arith.constant dense<0.000000e+00> : vector<1xf32>
    %85 = vector.multi_reduction <add>, %84, %cst_38 [1, 2] : vector<1x1x8xf32> to vector<1xf32>
    %86 = vector.shape_cast %85 : vector<1xf32> to vector<1x1x1xf32>
    %87 = vector.extract %86[0, 0, 0] : f32 from vector<1x1x1xf32>
    %88 = tpu.iota {dimensions = array<i32: 2>} : vector<1x1x128xi32>
    %c0_i32 = arith.constant 0 : i32
    %89 = vector.broadcast %c0_i32 : i32 to vector<1x1x128xi32>
    %90 = arith.cmpi eq, %88, %89 : vector<1x1x128xi32>
    %c1_i32 = arith.constant 1 : i32
    %91 = vector.broadcast %c1_i32 : i32 to vector<1x1x128xi32>
    %92 = arith.cmpi eq, %88, %91 : vector<1x1x128xi32>
    %cst_39 = arith.constant 0.000000e+00 : f32
    %93 = vector.broadcast %75 : f32 to vector<1x1x128xf32>
    %94 = vector.broadcast %cst_39 : f32 to vector<1x1x128xf32>
    %95 = arith.select %92, %93, %94 : vector<1x1x128xi1>, vector<1x1x128xf32>
    %96 = vector.broadcast %87 : f32 to vector<1x1x128xf32>
    %97 = arith.select %90, %96, %95 : vector<1x1x128xi1>, vector<1x1x128xf32>
    %c0_40 = arith.constant 0 : index
    %c0_41 = arith.constant 0 : index
    %c0_42 = arith.constant 0 : index
    %98 = vector.load %arg12[%c0_40, %c0_41, %c0_42] : memref<1x1x128xf32, #tpu.memory_space<vmem>>, vector<1x1x128xf32>
    tpu.vector_store %arg12[%c0_40, %c0_41, %c0_42], %97 {strides = array<i32>} : memref<1x1x128xf32, #tpu.memory_space<vmem>>, vector<1x1x128xf32>,
    return
  }
  func.func @transform_0(%arg0: i32) -> (i32, i32) {
    %c0_i32 = arith.constant 0 : i32
    %c0_i32_0 = arith.constant 0 : i32
    return %arg0, %c0_i32 : i32, i32
  }
  func.func @transform_1(%arg0: i32) -> (i32, i32, i32) {
    %c0_i32 = arith.constant 0 : i32
    %c0_i32_0 = arith.constant 0 : i32
    %c0_i32_1 = arith.constant 0 : i32
    return %arg0, %c0_i32, %c0_i32_0 : i32, i32, i32
  }
  func.func @transform_2(%arg0: i32) -> (i32, i32) {
    %c0_i32 = arith.constant 0 : i32
    %c0_i32_0 = arith.constant 0 : i32
    %c0_i32_1 = arith.constant 0 : i32
    return %c0_i32, %c0_i32_0 : i32, i32
  }
  func.func @transform_3(%arg0: i32) -> (i32, i32) {
    %c0_i32 = arith.constant 0 : i32
    %c0_i32_0 = arith.constant 0 : i32
    %c0_i32_1 = arith.constant 0 : i32
    return %c0_i32, %c0_i32_0 : i32, i32
  }
  func.func @transform_4(%arg0: i32) -> (i32, i32) {
    %c0_i32 = arith.constant 0 : i32
    %c0_i32_0 = arith.constant 0 : i32
    %c0_i32_1 = arith.constant 0 : i32
    return %c0_i32, %c0_i32_0 : i32, i32
  }
  func.func @transform_5(%arg0: i32) -> (i32, i32) {
    %c0_i32 = arith.constant 0 : i32
    %c0_i32_0 = arith.constant 0 : i32
    %c0_i32_1 = arith.constant 0 : i32
    return %c0_i32, %c0_i32_0 : i32, i32
  }
  func.func @transform_6(%arg0: i32) -> (i32, i32) {
    %c0_i32 = arith.constant 0 : i32
    %c0_i32_0 = arith.constant 0 : i32
    %c0_i32_1 = arith.constant 0 : i32
    return %c0_i32, %c0_i32_0 : i32, i32
  }
  func.func @transform_7(%arg0: i32) -> (i32, i32) {
    %c0_i32 = arith.constant 0 : i32
    %c0_i32_0 = arith.constant 0 : i32
    %c0_i32_1 = arith.constant 0 : i32
    return %c0_i32, %c0_i32_0 : i32, i32
  }
  func.func @transform_8(%arg0: i32) -> (i32, i32) {
    %c0_i32 = arith.constant 0 : i32
    %c0_i32_0 = arith.constant 0 : i32
    %c0_i32_1 = arith.constant 0 : i32
    return %c0_i32, %c0_i32_0 : i32, i32
  }
  func.func @transform_9(%arg0: i32) -> (i32, i32) {
    %c0_i32 = arith.constant 0 : i32
    %c0_i32_0 = arith.constant 0 : i32
    %c0_i32_1 = arith.constant 0 : i32
    return %c0_i32, %c0_i32_0 : i32, i32
  }
  func.func @transform_10(%arg0: i32) -> (i32, i32, i32) {
    %c0_i32 = arith.constant 0 : i32
    %c0_i32_0 = arith.constant 0 : i32
    %c0_i32_1 = arith.constant 0 : i32
    return %arg0, %c0_i32, %c0_i32_0 : i32, i32, i32
  }
  func.func @transform_11(%arg0: i32) -> (i32, i32, i32) {
    %c0_i32 = arith.constant 0 : i32
    %c0_i32_0 = arith.constant 0 : i32
    %c0_i32_1 = arith.constant 0 : i32
    return %arg0, %c0_i32, %c0_i32_0 : i32, i32, i32
  }
}

</mosaic_0001>

<bundles_post_ra>
// kernel: tpu_custom_call.1
= control target key start
LH: loop header
LB: loop body
LE: loop exit
PB: predicated region body
PF: predicated region fallthrough
CT: control target
= control target key end

     0   :  { %s1621_s0 = inlined_call_operand.hbm [shape: f32[16,96], index: 0, kind: input, shape index: {}]   ;;  %s1622_s1 = inlined_call_operand.vmem [shape: f32[2,1,8], index: 1, kind: input, shape index: {}]   ;;  %s1623_s2 = inlined_call_operand.vmem [shape: f32[1,32], index: 2, kind: input, shape index: {}]   ;;  %s1624_s3 = inlined_call_operand.vmem [shape: f32[1,32], index: 3, kind: input, shape index: {}]   ;;  %s1625_s4 = inlined_call_operand.hbm [shape: f32[32,32], index: 4, kind: input, shape index: {}]   ;;  %s1626_s5 = inlined_call_operand.vmem [shape: f32[1,32], index: 5, kind: input, shape index: {}]   ;;  %s1627_s6 = inlined_call_operand.hbm [shape: f32[32,32], index: 6, kind: input, shape index: {}]   ;;  %s1628_s7 = inlined_call_operand.vmem [shape: f32[1,32], index: 7, kind: input, shape index: {}]   ;;  %s1629_s8 = inlined_call_operand.vmem [shape: f32[1,32], index: 8, kind: input, shape index: {}]   ;;  %s1630_s9 = inlined_call_operand.<no memory space> [shape: f32[1,1], index: 9, kind: input, shape index: {}]   ;;  %s1631_s10 = inlined_call_operand.hbm [shape: f32[2,1,8], index: 10, kind: output, shape index: {0}]   ;;  %s1632_s11 = inlined_call_operand.hbm [shape: f32[2,1,128], index: 11, kind: output, shape index: {1}]  }
   0x1   :  { %1640 = sst [smem:[#allocation19_spill]] %s1625_s4  ;;  %v17_v0 = vstv %s1630_s9 }
   0x2   :  { %1641 = sst [smem:[#allocation20_spill]] %s1627_s6  ;;  %18 = vst [vmem:[#allocation2] sm:$0x1] %v17_v0 }
   0x3   :  { %19 = vsyncpa [#allocation4], 0 }
   0x4   :  { %21 = vsyncpa [#allocation4 + $0x1], 0 }
   0x5   :  { %22 = vsyncpa [#allocation7], 0 }
   0x6   :  { %23 = vsyncpa [#allocation5], 0 }
   0x7   :  { %25 = vsyncpa [#allocation5 + $0x1], 0 }
   0x8   :  { %26 = vsyncpa [#allocation11], 0 }
   0x9   :  { %28 = vsyncpa [#allocation11 + $0x1], 0  ;;  %s1372_s19 = smov 0   ;;  %s1374_s20 = smov 0  }
   0xa   :  { %s1376_s21 = smov 0   ;;  %s1378_s22 = smov 0  }
   0xb LB: > { %1642 = sst [smem:[#allocation16_spill]] %s1291_s21  ;;  %s1393_s9 = sadd.s32 4294967295, %s1295_s22   ;;  %s1295_s22 = sphi %s1378_s22, %s1661_s22   ;;  %s1291_s21 = sphi %s1376_s21, %s1663_s21   ;;  %s1287_s20 = sphi %s1374_s20, %s1665_s20   ;;  %s1283_s19 = sphi %s1372_s19, %s1664_s19  }
   0xc   : > { %s965_s23 = sadd.s32 4294967294, %s1295_s22   ;;  %p54_p0 = scmp.ne.s32.totalorder %s1287_s20, %s1283_s19 }
   0xd   : > { %p1633_p1 = scmp.eq.s32.totalorder %s1393_s9, 0  ;;  %p278_p3 = scmp.eq.s32.totalorder %s965_s23, 1 }
   0xe   : > { %p966_p5 = scmp.ge.s32.totalorder %s1295_s22, 1  ;;  %p311_p7 = scmp.lt.s32.totalorder %s1295_s22, 3 }
   0xf   : > { %p1402_p4 = por %p1633_p1, %p54_p0  ;;  %p1407_p6 = por %p278_p3, %p54_p0 }
  0x10   : > { %p1412_p8 = pnand %p966_p5, %p311_p7  ;;  %s1297_s27 = smov [#allocation6]  }
  0x11   : > { %s1643_s24 = scalar_select %p1402_p4, 1, 0 }
  0x12   : > { %s1644_s25 = scalar_select %p1407_p6, 1, 0 }
  0x13   : > { %s1645_s26 = scalar_select %p1412_p8, 1, 0 }
  0x14   : > { %s329_s28 = sshll.u32 %s1297_s27, 4  ;;  %p1047_p9 = pneg %p1412_p8  ;;  %s330_s28 = int_to_ptr.vmem [resolvable:$true] %s329_s28 }
  0x15   : > { %s1298_s30 = smov [#allocation8]   ;;  %s1128_s13 = scalar_lea.vmem %s330_s28, 512 }
  0x16   : > { %p1421_p11 = pnand %p1047_p9, %p1633_p1  ;;  %s345_s12 = sshll.u32 %s1298_s30, 4  ;;  %s346_s12 = int_to_ptr.vmem [resolvable:$true] %s345_s12 }
  0x17   : > { %p1129_p13 = scmp.ne.s32.totalorder %s330_s28, %s1128_s13  ;;  %p1136_p5 = scmp.lt.s32.totalorder %s330_s28, %s330_s28 }
  0x18   : > { %p1119_p12 = pneg %p1421_p11  ;;  %p1137_p7 = scmp.lt.s32.totalorder %s1128_s13, %s1128_s13 }
  0x1a   : > { %p1131_p0 = pnand %p1129_p13, %p1119_p12  ;;  %p1138_p10 = por %p1137_p7, %p1136_p5 }
  0x1c   : > { %p1132_p3 = pneg %p1131_p0 }
  0x1e   : > { %p1139_p9 = pnand %p1138_p10, %p1132_p3 }
  0x20   : > { %1142 = shalt.err (!%p1139_p9)
}
  0x21   : > { %s1299_s14 = smov 128   ;;  %s1300_s15 = smov 8  }
  0x22   : > { %s1647_s4 = sld [smem:[#allocation19_spill]]  ;;  %s1154_s18 = scalar_lea.vmem %s346_s12, 512 }
  0x23   : > { %p1155_p1 = scmp.ne.s32.totalorder %s346_s12, %s1154_s18  ;;  %p1162_p2 = scmp.lt.s32.totalorder %s346_s12, %s346_s12 }
  0x24   : > { %p1163_p6 = scmp.lt.s32.totalorder %s1154_s18, %s1154_s18 }
  0x25   : > { %p1157_p13 = pnand %p1155_p1, %p1119_p12 }
  0x26   : > { %p1164_p5 = por %p1163_p6, %p1162_p2 }
  0x27   : > { %p1158_p0 = pneg %p1157_p13 }
  0x28   : > { %1050 = dma.hbm_to_vmem [thread:$0]  (!%p1421_p11), %s1647_s4, 512, %s330_s28, [#allocation7], %s1299_s14, %s1299_s14, %s1300_s15  }
  0x29   : > { %p1165_p10 = pnand %p1164_p5, %p1158_p0 }
  0x2b   : > { %1168 = shalt.err (!%p1165_p10)
}
  0x2c   : > { %s1648_s6 = sld [smem:[#allocation20_spill]]  ;;  %s1444_s28 = sadd.s32 1, %s1295_s22  }
  0x2d   : > { %1649 = sst [smem:[#allocation17_spill]] %s1444_s28  ;;  %s41_s30 = sadd.s32 1, %s1291_s21 }
  0x2e   : > { %s38_s29 = ssub.s32 %s1295_s22, %s1444_s28  ;;  %p48_p1 = scmp.ne.s32.totalorder %s1291_s21, %s1287_s20 }
  0x2f   : > { %p39_p2 = scmp.eq.s32.totalorder %s38_s29, 0  ;;  %p49_p6 = scmp.eq.s32.totalorder %s1295_s22, 0 }
  0x30   : > { %p1650_p12 = scmp.eq.s32.totalorder %s1393_s9, 1  ;;  %p1067_p7 = scmp.lt.s32.totalorder %s1295_s22, 2 }
  0x31   : > { %s1460_s16 = scalar_select %p39_p2, %s1291_s21, %s41_s30  }
  0x32   : > { %1053 = dma.hbm_to_vmem [thread:$0]  (!%p1421_p11), %s1648_s6, 512, %s346_s12, [#allocation7], %s1299_s14, %s1299_s14, %s1300_s15  }
  0x33   : > { %p1454_p3 = por %p1650_p12, %p48_p1  ;;  %1652 = sst [smem:[#allocation18_spill]] %s1460_s16 }
  0x34   : > { %p50_p9 = por %p49_p6, %p48_p1  ;;  %s368_s17 = sand.u32 1, %s1291_s21  }
  0x35   : > { %s1651_s13 = scalar_select %p1454_p3, 1, 0 }
  0x36   : > { %s970_s18 = sshll.u32 %s368_s17, 3  ;;  %s971_s12 = sshll.u32 %s1295_s22, 7 }
  0x37   : > { %s1467_s23 = scalar_lea.hbm %s1621_s0, %s971_s12  ;;  %s372_s27 = scalar_lea.vmem [#allocation3], %s970_s18 }
  0x38   : > { %s379_s29 = sshll.u32 %s372_s27, 4  ;;  %p1469_p11 = pnand %p1067_p7, %p50_p9  ;;  %s380_s29 = int_to_ptr.vmem [resolvable:$true] %s379_s29 }
  0x39   : > { %s369_s30 = scalar_lea.sflag [#allocation4], %s368_s17  ;;  %s1169_s6 = scalar_lea.hbm %s1467_s23, 128 }
  0x3a   : > { %p1170_p13 = scmp.ne.s32.totalorder %s1467_s23, %s1169_s6  ;;  %p1171_p0 = pneg %p1469_p11 }
  0x3b   : > { %s1174_s15 = scalar_lea.hbm %s1621_s0, 256  ;;  %p1175_p1 = scmp.lt.s32.totalorder %s1467_s23, %s1621_s0 }
  0x3c   : > { %p1172_p5 = pnand %p1171_p0, %p1170_p13  ;;  %p1176_p2 = scmp.lt.s32.totalorder %s1174_s15, %s1169_s6 }
  0x3e   : > { %p1173_p10 = pneg %p1172_p5  ;;  %p1177_p6 = por %p1176_p2, %p1175_p1 }
  0x40   : > { %p1178_p12 = pnand %p1177_p6, %p1173_p10 }
  0x42   : > { %1181 = shalt.err (!%p1178_p12)
}
  0x43   : > { %s1182_s27 = scalar_lea.vmem %s380_s29, 128  ;;  %s1301_s17 = smov [#allocation3]  }
  0x44   : > { %p1183_p7 = scmp.ne.s32.totalorder %s380_s29, %s1182_s27  ;;  %s1187_s21 = sshll.u32 %s1301_s17, 4  ;;  %s1188_s21 = int_to_ptr.vmem [resolvable:$false] %s1187_s21 }
  0x45   : > { %s1189_s28 = scalar_lea.vmem %s1188_s21, 256  ;;  %p1190_p13 = scmp.lt.s32.totalorder %s380_s29, %s1188_s21 }
  0x46   : > { %p1185_p9 = pnand %p1183_p7, %p1171_p0  ;;  %p1191_p5 = scmp.lt.s32.totalorder %s1189_s28, %s1182_s27 }
  0x48   : > { %p1186_p3 = pneg %p1185_p9  ;;  %p1192_p4 = por %p1191_p5, %p1190_p13 }
  0x4a   : > { %p1193_p8 = pnand %p1192_p4, %p1186_p3 }
  0x4c   : > { %1196 = shalt.err (!%p1193_p8)
}
  0x4d   : > { %1057 = dma.hbm_to_vmem [thread:$0]  (!%p1469_p11), %s1467_s23, 128, %s380_s29, %s369_s30  }
  0x4e   : > { %p1654_p10 = scmp.ne.s32.totalorder %s1645_s26, 0 }
  0x4f   : > { %s1490_s6 = sand.u32 (!%p1654_p10), 1, %s1287_s20   ;;  %p1655_p0 = scmp.ne.s32.totalorder (!%p1654_p10), %s1643_s24, 0 }
  0x50   : > { %394 = sbr.rel (%p1654_p10) target bundleno = 1069 (0x42d), region = 60  ;;  %s973_s16 = sshll.u32 (!%p1654_p10), %s1490_s6, 3 }
  0x51   : > { %s397_s12 = scalar_lea.sflag (!%p1654_p10), [#allocation4], %s1490_s6  ;;  %s400_s21 = scalar_lea.vmem (!%p1654_p10), [#allocation3], %s973_s16 }
  0x55   : > { %1266 = dma.done.wait (%p1655_p0), %s397_s12, 128  }
  0x56   : > { %1268 = vsyncadd (%p1655_p0), %s397_s12, 4294967168  ;;  %p1656_p4 = scmp.eq.s32.totalorder %s1393_s9, 0 }
  0x58   : > { %1270 = dma.done.wait (%p1656_p4), [#allocation7], 1024   ;;  %p1657_p8 = pmov %p1656_p4 }
  0x59   : > { %v1302_v1 = vmov 0.0   ;;  %v456_v2 = vld [vmem:[%s400_s21] sm:$0xff]  ;;  %s1303_s4 = smov 96   ;;  %vm1304_vm0 = vmmov 0   ;;  %v502_v6 = vld [vmem:[#allocation6 + $0x8] sm:$0xff]  ;;  %s1305_s24 = smov 64   ;;  %v679_v13 = vlaneseq }
  0x5a   : > { %1272 = vsyncadd (%p1657_p8), [#allocation7], 4294966272  ;;  %1002 = vmatprep.subr.mxu0 %v1302_v1  ;;  %1013 = vmatprep.subr.mxu1 %v1302_v1  ;;  %v459_v3 = vmul.f32 %v456_v2, %v456_v2  ;;  %v504_v4 = vld [vmem:[#allocation6 + $0x18] sm:$0xff]  ;;  %v503_v5 = vld [vmem:[#allocation6 + $0x10] sm:$0xff]  ;;  %s985_s30 = sshll.u32 %s1393_s9, 3  ;;  %vm512_vm2 = vcmask 261120  }
  0x5b   : > { %478 = vrot.lane.b32.xlu0 %v456_v2, %s1303_s4  ;;  %1010 = vmatprep.mubr.msk.f32.mxu0 %vm1304_vm0, %v1302_v1  ;;  %v501_v7 = vld [vmem:[#allocation6] sm:$0xff]  ;;  %v976_v8 = vld [vmem:[%s1623_s2] ss:$0 sm:$0xff]  ;;  %v1520_v15 = vshrl.u32 %v679_v13, 7  ;;  %v1522_v16 = vstv %s985_s30  ;;  %v590_v35 = vld [vmem:[#allocation8 + $0x18] sm:$0xff]  ;;  %v1306_v52 = vmov 0  }
  0x5c   : > { %1003 = vmatpush3.msra.mxu0 %v504_v4  ;;  %1021 = vmatprep.mubr.msk.f32.mxu1 %vm1304_vm0, %v1302_v1  ;;  %v466_v9 = vadd.f32 %v976_v8, %v456_v2  ;;  %v977_v10 = vld [vmem:[%s1624_s3] ss:$0 sm:$0xff]  ;;  %v589_v36 = vld [vmem:[#allocation8 + $0x10] sm:$0xff]  ;;  %v587_v38 = vld [vmem:[#allocation8] sm:$0xff]  ;;  %p453_p3 = scmp.lt.s32.totalorder %s1393_s9, 1  ;;  %v1549_v4 = vand.u32 127, %v679_v13 }
  0x5d   : > { %488 = vrot.lane.b32.xlu1 %v459_v3, %s1303_s4  ;;  %1004 = vmatprep.subr.mxu0 %v1302_v1  ;;  %v474_v12 = vadd.f32 %v977_v10, %v459_v3  ;;  %v773_v20 = vadd.s32 %v1522_v16, %v1520_v15  ;;  %v588_v37 = vld [vmem:[#allocation8 + $0x8] sm:$0xff]  ;;  %v681_v59 = vsub.s32 0, %v1520_v15  ;;  %vm767_vm3 = vcmask 57344   ;;  %s446_s26 = scalar_lea.vmem [#allocation9], %s1490_s6  ;;  %s986_s28 = sshll.u32 %s1393_s9, 4 }
  0x5e   : > { %1005 = vmatpush3.msra.mxu0 %v503_v5  ;;  %v467_v11 = vmul.f32 %v466_v9, %v466_v9  ;;  %1014 = vmatpush3.msra.mxu1 %v590_v35  ;;  %v978_v46 = vld [vmem:[%s1626_s5] ss:$0 sm:$0xff]  ;;  %s454_s12 = scalar_select %p453_p3, %s1393_s9, 1 }
  0x5f   : > { %482 = vrot.lane.b32.xlu0 %v456_v2, %s1305_s24  ;;  %1006 = vmatprep.subr.mxu0 %v1302_v1  ;;  %vm777_vm1 = vcmp.lt.s32.totalorder %v773_v20, 13  ;;  %v673_v51 = vld [vmem:[#allocation2] sm:$0x1]  ;;  %s830_s23 = sshll.u32 %s446_s26, 4  ;;  %s828_s14 = scalar_lea.hbm %s1631_s10, %s986_s28  ;;  %s831_s23 = int_to_ptr.vmem [resolvable:$true] %s830_s23 }
  0x60   : > { %1007 = vmatpush3.msra.mxu0 %v502_v6  ;;  %v475_v14 = vsub.f32 %v467_v11, %v474_v12  ;;  %1015 = vmatprep.subr.mxu1 %v1302_v1  ;;  %v980_v53 = vld [vmem:[%s1628_s7] ss:$0 sm:$0xff]  ;;  %v776_v6 = vadd.s32 %v1549_v4, %v1522_v16  ;;  %s814_s15 = scalar_lea.sflag [#allocation5], %s1490_s6  ;;  %s1197_s18 = scalar_lea.vmem %s831_s23, 16 }
  0x61   : > { %492 = vrot.lane.b32.xlu1 %v459_v3, %s1305_s24  ;;  %1008 = vmatprep.subr.mxu0 %v1302_v1  ;;  %v672_v58 = vld [vmem:[%s1629_s8] sm:$0x1]  ;;  %s455_s24 = scalar_lea.vmem %s1622_s1, %s454_s12  ;;  %p1198_p11 = scmp.ne.s32.totalorder %s831_s23, %s1197_s18 }
  0x62   : > { %1009 = vmatpush3.msra.mxu0 %v501_v7  ;;  %v476_v18 = vmul.f32 0.5, %v475_v14  ;;  %1016 = vmatpush3.msra.mxu1 %v589_v36  ;;  %v792_v8 = vld [vmem:[%s455_s24] sm:$0x1]  ;;  %vm791_vm4 = vcmp.lt.s32.totalorder %v776_v6, 13  ;;  %p1658_p1 = scmp.ne.s32.totalorder %s1651_s13, 0  ;;  %s1307_s27 = smov [#allocation9]  }
  0x63   : > { %1024 = vmatprep.subr.mxu0 %v1302_v1  ;;  %1017 = vmatprep.subr.mxu1 %v1302_v1  ;;  %s1201_s17 = sshll.u32 %s1307_s27, 4  ;;  %s1202_s17 = int_to_ptr.vmem [resolvable:$false] %s1201_s17 }
  0x64   : > { %v496_v25 = vmul.f32 %v476_v18, %v476_v18  ;;  %1018 = vmatpush3.msra.mxu1 %v588_v37  ;;  %1112 = vset.pattern.permute.xlu0 %v1306_v52  ;;  %p1199_p2 = pnand %p1198_p11, %p1658_p1  ;;  %s1203_s16 = scalar_lea.vmem %s1202_s17, 32 }
  0x65   : > { %1019 = vmatprep.subr.mxu1 %v1302_v1  ;;  %676 = vperm.xlu0 %1112, %v673_v51   ;;  %p1204_p12 = scmp.lt.s32.totalorder %s831_s23, %s1202_s17  ;;  %p1205_p7 = scmp.lt.s32.totalorder %s1203_s16, %s1197_s18 }
  0x66   : > { %1020 = vmatpush3.msra.mxu1 %v587_v38  ;;  %p1200_p6 = pneg %p1199_p2 }
  0x67   : > { %p1206_p9 = por %p1205_p7, %p1204_p12 }
  0x69   : > { %p1207_p13 = pnand %p1206_p9, %p1200_p6 }
  0xcd   : > { %v479_v17 = vpop.permute.xlu0 %478 }
  0xce   : > { %v481_v21 = vadd.f32 %v479_v17, %v456_v2 }
  0xcf   : > { %v489_v19 = vpop.permute.xlu1 %488 }
  0xd0   : > { %v491_v23 = vadd.f32 %v489_v19, %v459_v3 }
  0xd1   : > { %v483_v22 = vpop.permute.xlu0 %482 }
  0xd2   : > { %v485_v24 = vadd.f32 %v483_v22, %v481_v21 }
  0xd3   : > { %v493_v26 = vpop.permute.xlu1 %492 }
  0xd4   : > { %v486_v27 = vadd.f32 %v485_v24, %v476_v18  ;;  %v495_v28 = vadd.f32 %v493_v26, %v491_v23 }
  0xd6   : > { %v498_v29 = vmul.f32 %v486_v27, %v486_v27  ;;  %v497_v30 = vadd.f32 %v496_v25, %v495_v28  ;;  %v780_v31 = vsel %vm777_vm1, %v495_v28, 0.0 }
  0xd7   : > { %v781_v32 = vsel %vm512_vm2, %v780_v31, 0.0 }
  0xd8   : > { %v499_v33 = vsub.f32 %v498_v29, %v497_v30  ;;  %782 = vadd.xlane.f32.xlu1 %v781_v32 }
  0xda   : > { %v500_v34 = vmul.f32 0.5, %v499_v33 }
  0xdc   : > { %1011 = vmatmul.mubr.msk.f32.vlgmr.msra.gmra.mxu0 %vm512_vm2, %v500_v34 }
  0xdd   : > { %1026 = vmatprep.mubr.msk.f32.mxu0 %vm1304_vm0, %v1302_v1 }
  0xe0   : > { %v677_v60 = vpop.permute.xlu0 %676 }
  0xe1   : > { %v682_v61 = vrot.slane %v677_v60, %v681_v59 }
 0x161   : > { %v783_v39 = vpop.xlane.xlu1 %782 }
 0x162   : > { %v784_v40 = vrot.slane %v783_v39, 4 }
 0x164   : > { %v785_v41 = vadd.f32 %v784_v40, %v783_v39 }
 0x166   : > { %v786_v42 = vrot.slane %v785_v41, 2 }
 0x168   : > { %v787_v43 = vadd.f32 %v786_v42, %v785_v41 }
 0x16a   : > { %v788_v44 = vrot.slane %v787_v43, 1 }
 0x16c   : > { %v789_v45 = vadd.f32 %v788_v44, %v787_v43 }
 0x16e   : > { %1029 = vpush %v789_v45 }
 0x19c   : > { %v582_v47 = vpop.f32.mrf.mxu0 }
 0x19d   : > { %v583_v48 = vadd.f32 %v978_v46, %v582_v47 }
 0x19e   : > { %v1012_v49 = vpop.f32.mrf.mxu0 }
 0x19f   : > { %v586_v50 = vmax.f32 %v583_v48, 0.0 }
 0x1a1   : > { %1022 = vmatmul.mubr.msk.f32.vlgmr.msra.gmra.mxu1 %vm512_vm2, %v586_v50 }
 0x261   : > { %v667_v54 = vpop.f32.mrf.mxu1 }
 0x262   : > { %v668_v55 = vadd.f32 %v980_v53, %v667_v54 }
 0x263   : > { %v1023_v56 = vpop.f32.mrf.mxu1 }
 0x264   : > { %v671_v57 = vmax.f32 %v668_v55, 0.0 }
 0x266   : > { %1025 = vmatpush3.xpose.msk.msra.mxu0 %vm512_vm2, %v671_v57 }
 0x269   : > { %1027 = vmatmul.mubr.msk.f32.vlgmr.msra.gmra.mxu0 %vm512_vm2, %v672_v58 }
 0x329   : > { %v755_v62 = vpop.f32.mrf.mxu0 }
 0x32a   : > { %v756_v63 = vadd.f32 %v755_v62, %v682_v61 }
 0x32b   : > { %v1028_v0 = vpop.f32.mrf.mxu0 }
 0x32c   : > { %v984_v1 = vmul.f32 -1.442695, %v756_v63 }
 0x32e   : > { %1113 = vpow2.f32 %v984_v1 }
 0x33b   : > { %v1114_v2 = vpop.eup %1113 }
 0x33c   : > { %v762_v3 = vadd.f32 1.0, %v1114_v2 }
 0x33e   : > { %1115 = vrcp.f32 %v762_v3 }
 0x34b   : > { %v1116_v5 = vpop.eup %1115 }
 0x34c   : > { %v765_v7 = vmul.f32 4.0, %v1116_v5 }
 0x34e   : > { %v766_v9 = vadd.f32 1.0, %v765_v7 }
 0x350   : > { %v793_v10 = vsub.f32 %v766_v9, %v792_v8  ;;  %768 = vst.msk [vmem:[%s446_s26] sm:$0x1] %vm767_vm3, %v766_v9 }
 0x352   : > { %v794_v11 = vsel %vm791_vm4, %v793_v10, 0.0 }
 0x353   : > { %v795_v12 = vmul.f32 %v794_v11, %v794_v11 }
 0x355   : > { %v796_v13 = vsel %vm767_vm3, %v795_v12, 0.0 }
 0x356   : > { %797 = vadd.xlane.f32.xlu0 %v796_v13 }
 0x357   : > { %1210 = shalt.err (!%p1207_p13)
}
 0x358   : > { %s1211_s12 = scalar_lea.hbm %s828_s14, 16  ;;  %s1215_s24 = scalar_lea.hbm %s1631_s10, 32 }
 0x359   : > { %p1212_p5 = scmp.ne.s32.totalorder %s828_s14, %s1211_s12  ;;  %p1216_p4 = scmp.lt.s32.totalorder %s828_s14, %s1631_s10 }
 0x35a   : > { %p1217_p8 = scmp.lt.s32.totalorder %s1215_s24, %s1211_s12 }
 0x35b   : > { %p1213_p10 = pnand %p1212_p5, %p1658_p1 }
 0x35c   : > { %p1218_p3 = por %p1217_p8, %p1216_p4 }
 0x35d   : > { %p1214_p0 = pneg %p1213_p10 }
 0x35f   : > { %p1219_p11 = pnand %p1218_p3, %p1214_p0 }
 0x361   : > { %1222 = shalt.err (!%p1219_p11)
}
 0x362   : > { %1043 = dma.vmem_to_hbm [thread:$0]  (%p1658_p1), %s831_s23, 16, %s828_s14, %s814_s15   ;;  %vm807_vm5 = vcmp.eq.s32.totalorder %v1549_v4, 1  ;;  %vm806_vm6 = vcmp.eq.s32.totalorder %v1549_v4, 0 }
 0x363   : > { %s1030_s30 = spop %1029  ;;  %s452_s18 = scalar_lea.vmem [#allocation10], %s1490_s6 }
 0x364   : > { %v808_v21 = vstv %s1030_s30  ;;  %s843_s27 = sshll.u32 %s452_s18, 4  ;;  %s1584_s17 = scalar_lea.hbm %s1632_s11, %s986_s28  ;;  %s844_s27 = int_to_ptr.vmem [resolvable:$true] %s843_s27 }
 0x365   : > { %v809_v22 = vsel %vm807_vm5, %v808_v21, 0.0  ;;  %s818_s16 = scalar_lea.sflag [#allocation11], %s1490_s6  ;;  %s1223_s12 = scalar_lea.vmem %s844_s27, 16 }
 0x366   : > { %p1224_p2 = scmp.ne.s32.totalorder %s844_s27, %s1223_s12  ;;  %s1308_s21 = smov [#allocation10]  }
 0x367   : > { %s1227_s4 = sshll.u32 %s1308_s21, 4  ;;  %s1228_s4 = int_to_ptr.vmem [resolvable:$false] %s1227_s4 }
 0x368   : > { %p1225_p6 = pnand %p1224_p2, %p1658_p1  ;;  %s1229_s24 = scalar_lea.vmem %s1228_s4, 32 }
 0x369   : > { %p1230_p7 = scmp.lt.s32.totalorder %s844_s27, %s1228_s4  ;;  %p1231_p9 = scmp.lt.s32.totalorder %s1229_s24, %s1223_s12 }
 0x36a   : > { %p1226_p12 = pneg %p1225_p6 }
 0x36b   : > { %p1232_p13 = por %p1231_p9, %p1230_p7 }
 0x36d   : > { %p1233_p5 = pnand %p1232_p13, %p1226_p12 }
 0x3df   : > { %v798_v14 = vpop.xlane.xlu0 %797 }
 0x3e0   : > { %v799_v15 = vrot.slane %v798_v14, 4 }
 0x3e2   : > { %v800_v16 = vadd.f32 %v799_v15, %v798_v14 }
 0x3e4   : > { %v801_v17 = vrot.slane %v800_v16, 2 }
 0x3e6   : > { %v802_v18 = vadd.f32 %v801_v17, %v800_v16 }
 0x3e8   : > { %v803_v19 = vrot.slane %v802_v18, 1 }
 0x3ea   : > { %v804_v20 = vadd.f32 %v803_v19, %v802_v18 }
 0x3ec   : > { %1031 = vpush %v804_v20 }
 0x41d   : > { %s1032_s23 = spop %1031 }
 0x41e   : > { %v810_v23 = vstv %s1032_s23 }
 0x41f   : > { %v811_v24 = vsel %vm806_vm6, %v810_v23, %v809_v22 }
 0x420   : > { %812 = vst [vmem:[%s452_s18] sm:$0x1] %v811_v24 }
 0x421   : > { %1236 = shalt.err (!%p1233_p5)
}
 0x422   : > { %s1237_s9 = scalar_lea.hbm %s1584_s17, 16  ;;  %s1241_s26 = scalar_lea.hbm %s1632_s11, 32 }
 0x423   : > { %p1238_p10 = scmp.ne.s32.totalorder %s1584_s17, %s1237_s9  ;;  %p1242_p8 = scmp.lt.s32.totalorder %s1584_s17, %s1632_s11 }
 0x424   : > { %p1243_p3 = scmp.lt.s32.totalorder %s1241_s26, %s1237_s9 }
 0x425   : > { %p1239_p0 = pnand %p1238_p10, %p1658_p1 }
 0x426   : > { %p1244_p11 = por %p1243_p3, %p1242_p8 }
 0x427   : > { %p1240_p4 = pneg %p1239_p0 }
 0x429   : > { %p1245_p2 = pnand %p1244_p11, %p1240_p4 }
 0x42b   : > { %1248 = shalt.err (!%p1245_p2)
}
 0x42c   : > { %1044 = dma.vmem_to_hbm [thread:$0]  (%p1658_p1), %s844_s27, 16, %s1584_s17, %s818_s16  }
 0x42d PF: > { %s855_s18 = sand.u32 1, %s1283_s19   ;;  %p1659_p6 = scmp.ne.s32.totalorder %s1644_s25, 0 }
 0x42e   : > { %p1660_p12 = scmp.ge.s32.totalorder %s1295_s22, 2  ;;  %s856_s23 = scalar_lea.sflag [#allocation5], %s855_s18 }
 0x430   : > { %p1059_p7 = pnand %p1660_p12, %p1659_p6 }
 0x432   : > { %p1060_p9 = pneg %p1059_p7 }
 0x434   : > { %1274 = dma.done.wait (%p1060_p9), %s856_s23, 16  }
 0x435   : > { %1276 = vsyncadd (%p1060_p9), %s856_s23, 4294967280  ;;  %s864_s14 = scalar_lea.sflag [#allocation11], %s855_s18 }
 0x436   : > { %1278 = dma.done.wait (%p1060_p9), %s864_s14, 16  }
 0x437   : > { %1280 = vsyncadd (%p1060_p9), %s864_s14, 4294967280  ;;  %s1661_s22 = sld [smem:[#allocation17_spill]]  ;;  %s1664_s19 = smov %s1287_s20 }
 0x438   : > { %s1662_s13 = sld [smem:[#allocation16_spill]] }
 0x439   : > { %s1663_s21 = sld [smem:[#allocation18_spill]] }
 0x43d   : > { %p31_p1 = scmp.ge.s32.totalorder %s1661_s22, 4  }
 0x43e   : > { %s1665_s20 = smov %s1662_s13 }
 0x43f   :  { %33 = sbr.rel (!%p31_p1) target bundleno = 11 (0xb), region = 133 }
 0x444   :  { %868 = vsyncpa [#allocation4], 1 }
 0x445   :  { %870 = vsyncpa [#allocation4 + $0x1], 1 }
 0x446   :  { %871 = vsyncpa [#allocation7], 1 }
 0x447   :  { %872 = vsyncpa [#allocation5], 1 }
 0x448   :  { %874 = vsyncpa [#allocation5 + $0x1], 1 }
 0x449   :  { %875 = vsyncpa [#allocation11], 1 }
 0x44a   :  { %877 = vsyncpa [#allocation11 + $0x1], 1 }

</bundles_post_ra>
